<compile_context>
chip_gen: v6e
topology: v6e:2x2x1
jax: 0.10.0
libtpu: 0.0.40
codegen_flags: <defaults>
</compile_context>

<pallas_src>
import functools
import math

import jax
import jax.numpy as jnp
from jax.experimental import pallas as pl
from jax.experimental.pallas import tpu as pltpu


_MAX_TR = 256          # max sublane rows per block (multiple of 8)
_MAX_TN = 128 * 1024   # cap on the lane tile


def _vmem_budget():
    """Returns (input_tile_budget_bytes, vmem_limit_bytes), per-generation."""
    cap = 64 * 1024 * 1024          # conservative fallback == v7x physical VMEM
    try:
        info = pltpu.get_tpu_info()
        cap = int(getattr(info, "vmem_capacity_bytes", cap)) or cap
    except Exception:
        pass
    # 2 inputs x 2 pipeline buffers must fit in in_budget.
    in_budget = min(cap // 4, 24 * 1024 * 1024)
    vmem_limit = min(max(2 * in_budget, 32 * 1024 * 1024), (cap * 3) // 4)
    return in_budget, vmem_limit


def _pick_tile_n(per_col_bytes, n_cols, budget):
    """Largest multiple-of-128 lane tile whose double-buffered inputs fit budget."""
    tn = budget // max(per_col_bytes, 1)
    tn = (tn // 128) * 128
    tn = min(tn, _MAX_TN, ((n_cols + 127) // 128) * 128)
    return int(max(tn, 128))


def _pick_row_multiplier(rows, n):
    """Fold spatial positions into extra rows so vreg sublanes are utilized.

    [R, N] -> [R*m, N/m] is a free row-major reshape; per-row sums are
    regrouped in the epilogue.  Only picks m that strictly improves the
    sublane utilization (useful when B*C < 8).
    """
    def util(r):
        return r / (((r + 7) // 8) * 8)
    best_m, best_u = 1, util(rows)
    for m in (2, 4, 8):
        if n % m:
            continue
        u = util(rows * m)
        if u > best_u + 1e-9:
            best_m, best_u = m, u
    return best_m


# ----------------------------------------------------------------------------
# Kernels
# ----------------------------------------------------------------------------

def _gdl_dense_kernel(pred_ref, target_ref, out_t, out_pt, out_p,
                      acc_t, acc_pt, acc_p, *, n_valid, tile_n, n_inner):
    """Dense (float) target path.  pred/target tiles: (TR, TN), row-packed."""
    no = pl.program_id(1)
    ni = pl.program_id(2)
    tr = acc_t.shape[1]

    @pl.when(ni == 0)
    def _init():
        acc_t[...] = jnp.zeros_like(acc_t)
        acc_pt[...] = jnp.zeros_like(acc_pt)
        acc_p[...] = jnp.zeros_like(acc_p)

    remaining = n_valid - (no * n_inner + ni) * tile_n

    def _accum(p, t):
        # Per-tile lane reduction straight to per-row scalars: no full-width
        # (TR, TN) accumulator read-modify-write, so the vector-store slot
        # never becomes the binding unit.
        acc_t[...] += jnp.sum(t, axis=1).reshape(1, tr)
        acc_pt[...] += jnp.sum(p * t, axis=1).reshape(1, tr)
        acc_p[...] += jnp.sum(p, axis=1).reshape(1, tr)

    # Fast path: interior tiles, no masking at all.
    @pl.when(remaining >= tile_n)
    def _fast():
        _accum(pred_ref[...].astype(jnp.float32),
               target_ref[...].astype(jnp.float32))

    # Slow path: tail tile only (Pallas does NOT zero out-of-range lanes).
    @pl.when(jnp.logical_and(remaining > 0, remaining < tile_n))
    def _tail():
        lane = jax.lax.broadcasted_iota(jnp.int32, pred_ref.shape, 1)
        mask = lane < remaining
        p = jnp.where(mask, pred_ref[...].astype(jnp.float32), 0.0)
        t = jnp.where(mask, target_ref[...].astype(jnp.float32), 0.0)
        _accum(p, t)

    # remaining <= 0 (over-split iterations): nothing to do -- skipped.

    @pl.when(ni == pl.num_programs(2) - 1)
    def _fin():
        out_t[...] = acc_t[...]
        out_pt[...] = acc_pt[...]
        out_p[...] = acc_p[...]


def _gdl_label_kernel(pred_ref, label_ref, out_t, out_pt, out_p,
                      acc_t, acc_pt, acc_p, *, n_valid, tile_n, n_inner,
                      num_classes):
    """Integer-label target path: one-hot built in-kernel from a (1, TN) tile."""
    # TODO(synk): sublane-pack the label path (fold spatial into sublanes) the
    # way the dense path does; needs a per-row label broadcast scheme.
    no = pl.program_id(1)
    ni = pl.program_id(2)
    c = num_classes

    @pl.when(ni == 0)
    def _init():
        acc_t[...] = jnp.zeros_like(acc_t)
        acc_pt[...] = jnp.zeros_like(acc_pt)
        acc_p[...] = jnp.zeros_like(acc_p)

    remaining = n_valid - (no * n_inner + ni) * tile_n
    class_ids = jax.lax.broadcasted_iota(jnp.int32, (c, tile_n), 0)

    # Fast path: interior tiles, no masking.
    @pl.when(remaining >= tile_n)
    def _fast():
        p = pred_ref[...].astype(jnp.float32)                     # (C, TN)
        t = (class_ids == label_ref[...]).astype(jnp.float32)     # (C, TN)
        acc_t[...] += jnp.sum(t, axis=1).reshape(1, c)
        acc_pt[...] += jnp.sum(p * t, axis=1).reshape(1, c)
        acc_p[...] += jnp.sum(p, axis=1).reshape(1, c)

    # Tail tile: mask the stale lanes.  t carries the mask, so p*t needs none;
    # only the plain pred sum needs a masked select.
    @pl.when(jnp.logical_and(remaining > 0, remaining < tile_n))
    def _tail():
        lane = jax.lax.broadcasted_iota(jnp.int32, (c, tile_n), 1)
        mask = lane < remaining
        p = pred_ref[...].astype(jnp.float32)
        t = ((class_ids == label_ref[...]) & mask).astype(jnp.float32)
        acc_t[...] += jnp.sum(t, axis=1).reshape(1, c)
        acc_pt[...] += jnp.sum(p * t, axis=1).reshape(1, c)
        acc_p[...] += jnp.sum(jnp.where(mask, p, 0.0), axis=1).reshape(1, c)

    @pl.when(ni == pl.num_programs(2) - 1)
    def _fin():
        out_t[...] = acc_t[...]
        out_pt[...] = acc_pt[...]
        out_p[...] = acc_p[...]


# ----------------------------------------------------------------------------
# pallas_call wrappers for the two reduction paths
# ----------------------------------------------------------------------------

def _gdl_sums_dense(pred2, tgt2, *, tile_n=None, n_split=None):
    """pred2/tgt2: [R, NC] row-packed views.  Returns three [R] f32 row sums."""
    R, NC = pred2.shape
    in_budget, vmem_limit = _vmem_budget()

    if R <= _MAX_TR:
        tr, n_row_tiles = R, 1
    else:
        tr = _MAX_TR
        n_row_tiles = -(-R // tr)

    pb = jnp.dtype(pred2.dtype).itemsize
    tb = jnp.dtype(tgt2.dtype).itemsize
    if tile_n is None:
        tile_n = _pick_tile_n(2 * tr * (pb + tb), NC, in_budget)
    else:
        tile_n = max(128, ((int(tile_n) + 127) // 128) * 128)
    n_tiles = -(-NC // tile_n)

    # Split the column reduction across a second "parallel" axis so both v7x
    # TensorCores stay busy when the row axis alone cannot balance them.
    if n_split is None:
        n_split = 2 if (n_row_tiles % 2 == 1 and n_tiles >= 2) else 1
    n_split = max(1, min(int(n_split), n_tiles))
    n_inner = -(-n_tiles // n_split)

    def data_idx(ri, no, ni):
        # Clamp: over-split iterations reuse the previous block index, so no
        # extra DMA is issued; their compute is skipped in-kernel.
        return (ri, jnp.minimum(no * n_inner + ni, n_tiles - 1))

    kernel = functools.partial(_gdl_dense_kernel, n_valid=NC, tile_n=tile_n,
                               n_inner=n_inner)

    out_shape = jax.ShapeDtypeStruct((n_row_tiles, n_split, tr), jnp.float32)
    out_spec = pl.BlockSpec((None, 1, tr), lambda ri, no, ni: (ri, no, 0))

    sum_t, sum_pt, sum_p = pl.pallas_call(
        kernel,
        out_shape=(out_shape, out_shape, out_shape),
        grid_spec=pltpu.PrefetchScalarGridSpec(
            num_scalar_prefetch=0,
            grid=(n_row_tiles, n_split, n_inner),
            in_specs=[pl.BlockSpec((tr, tile_n), data_idx),
                      pl.BlockSpec((tr, tile_n), data_idx)],
            out_specs=(out_spec, out_spec, out_spec),
            scratch_shapes=[pltpu.VMEM((1, tr), jnp.float32)] * 3),
        compiler_params=pltpu.CompilerParams(
            dimension_semantics=("parallel", "parallel", "arbitrary"),
            vmem_limit_bytes=vmem_limit),
        cost_estimate=pl.CostEstimate(
            flops=3 * R * NC, transcendentals=0,
            bytes_accessed=R * NC * (pb + tb) + 3 * n_row_tiles * n_split * tr * 4),
    )(pred2, tgt2)

    def fold(s):
        return s.sum(axis=1).reshape(-1)[:R]   # fold splits, drop padded rows
    return fold(sum_t), fold(sum_pt), fold(sum_p)


def _gdl_sums_labels(pred3, labels3, *, tile_n=None, n_split=None):
    """pred3: [B, C, N]; labels3: [B, 1, N] int32.  Returns three [B, C] sums."""
    B, C, N = pred3.shape
    in_budget, vmem_limit = _vmem_budget()

    pb = jnp.dtype(pred3.dtype).itemsize
    if tile_n is None:
        tile_n = _pick_tile_n(2 * (C * pb + 4), N, in_budget)
    else:
        tile_n = max(128, ((int(tile_n) + 127) // 128) * 128)
    n_tiles = -(-N // tile_n)

    if n_split is None:
        n_split = 2 if (B % 2 == 1 and n_tiles >= 2) else 1
    n_split = max(1, min(int(n_split), n_tiles))
    n_inner = -(-n_tiles // n_split)

    def data_idx(b, no, ni):
        return (b, 0, jnp.minimum(no * n_inner + ni, n_tiles - 1))

    kernel = functools.partial(_gdl_label_kernel, n_valid=N, tile_n=tile_n,
                               n_inner=n_inner, num_classes=C)

    out_shape = jax.ShapeDtypeStruct((B, n_split, C), jnp.float32)
    out_spec = pl.BlockSpec((None, 1, C), lambda b, no, ni: (b, no, 0))

    sum_t, sum_pt, sum_p = pl.pallas_call(
        kernel,
        out_shape=(out_shape, out_shape, out_shape),
        grid_spec=pltpu.PrefetchScalarGridSpec(
            num_scalar_prefetch=0,
            grid=(B, n_split, n_inner),
            in_specs=[pl.BlockSpec((None, C, tile_n), data_idx),
                      pl.BlockSpec((None, 1, tile_n), data_idx)],
            out_specs=(out_spec, out_spec, out_spec),
            scratch_shapes=[pltpu.VMEM((1, C), jnp.float32)] * 3),
        compiler_params=pltpu.CompilerParams(
            dimension_semantics=("parallel", "parallel", "arbitrary"),
            vmem_limit_bytes=vmem_limit),
        cost_estimate=pl.CostEstimate(
            flops=4 * B * C * N, transcendentals=0,
            bytes_accessed=B * C * N * pb + B * N * 4 + 3 * B * n_split * C * 4),
    )(pred3, labels3)

    return sum_t.sum(axis=1), sum_pt.sum(axis=1), sum_p.sum(axis=1)


# ----------------------------------------------------------------------------
# Public entry point
# ----------------------------------------------------------------------------

@functools.partial(jax.jit, static_argnames=("smooth", "tile_n", "n_split"))
def generalized_dice_loss(pred, target, smooth=1.0, tile_n=None, n_split=None):
    """JAX/Pallas port of GeneralizedDiceLoss.forward.

    pred:   [B, C, D, H, W] float (f32 or bf16)
    target: [B, C, D, H, W] float  or  [B, D, H, W] integer labels
    """
    B, C = pred.shape[0], pred.shape[1]
    N = int(math.prod(pred.shape[2:]))

    if target.ndim < pred.ndim and C > 1:
        # Integer labels: one-hot is built inside the kernel (never in HBM).
        sum_t, sum_pt, sum_p = _gdl_sums_labels(
            pred.reshape(B, C, N), target.reshape(B, 1, N).astype(jnp.int32),
            tile_n=tile_n, n_split=n_split)
    else:
        tgt = target
        if target.ndim < pred.ndim:          # C == 1: target.unsqueeze(1) branch
            tgt = target.reshape(B, 1, N)
        if jnp.issubdtype(tgt.dtype, jnp.bool_):
            tgt = tgt.astype(jnp.float32)
        R = B * C
        m = _pick_row_multiplier(R, N)       # fold spatial into sublane rows
        pred2 = pred.reshape(R * m, N // m)
        tgt2 = tgt.reshape(R * m, N // m)
        st, spt, sp = _gdl_sums_dense(pred2, tgt2, tile_n=tile_n, n_split=n_split)
        sum_t = st.reshape(B, C, m).sum(axis=2)
        sum_pt = spt.reshape(B, C, m).sum(axis=2)
        sum_p = sp.reshape(B, C, m).sum(axis=2)

    weight = 1.0 / (sum_t ** 2 + smooth)                         # [B, C]
    weighted_intersection = jnp.sum(weight * sum_pt, axis=1)     # [B]
    weighted_union = jnp.sum(weight * (sum_p + sum_t), axis=1)   # [B]
    dice = (2.0 * weighted_intersection + smooth) / (weighted_union + smooth)
    return jnp.mean(1.0 - dice)


def _reference(pred, target, smooth=1.0):
    """Pure-JAX reference mirroring the PyTorch module (for sanity checks)."""
    if target.ndim < pred.ndim:
        if pred.shape[1] == 1:
            target = target[:, None]
        else:
            target = jax.nn.one_hot(target.astype(jnp.int32), pred.shape[1],
                                    dtype=jnp.float32)
            target = jnp.transpose(target, (0, 4, 1, 2, 3))
    B, C = pred.shape[0], pred.shape[1]
    pred_flat = pred.reshape(B, C, -1).astype(jnp.float32)
    target_flat = target.reshape(B, C, -1).astype(jnp.float32)
    weight = 1.0 / (jnp.sum(target_flat, axis=2) ** 2 + smooth)
    intersection = jnp.sum(pred_flat * target_flat, axis=2)
    weighted_intersection = jnp.sum(weight * intersection, axis=1)
    union = jnp.sum(pred_flat, axis=2) + jnp.sum(target_flat, axis=2)
    weighted_union = jnp.sum(weight * union, axis=1)
    dice = (2.0 * weighted_intersection + smooth) / (weighted_union + smooth)
    return jnp.mean(1.0 - dice)


if __name__ == "__main__":
    key = jax.random.PRNGKey(0)
    k1, k2, k3, k4, k5 = jax.random.split(key, 5)

    # --- Test A: integer labels, one-hot built inside the kernel ------------
    B, C, D, H, W = 2, 4, 4, 6, 7            # N = 168 -> exercises tail masking
    pred = jax.nn.softmax(
        jax.random.normal(k1, (B, C, D, H, W), jnp.float32), axis=1)
    labels = jax.random.randint(k2, (B, D, H, W), 0, C)
    loss_a = jax.block_until_ready(generalized_dice_loss(pred, labels, smooth=1.0))
    ref_a = jax.block_until_ready(_reference(pred, labels, smooth=1.0))
    assert jnp.allclose(loss_a, ref_a, atol=1e-5, rtol=1e-5), (loss_a, ref_a)

    # --- Test A2: labels with forced small tile + split (fast + tail paths) -
    loss_a2 = jax.block_until_ready(
        generalized_dice_loss(pred, labels, smooth=1.0, tile_n=128, n_split=2))
    assert jnp.allclose(loss_a2, ref_a, atol=1e-5, rtol=1e-5), (loss_a2, ref_a)

    # --- Test B: dense float target, forced tile/split, ragged over-split ---
    B2, C2, D2, H2, W2 = 2, 3, 3, 1, 107     # N = 321 -> 3 tiles of 128
    pred_b = jax.nn.softmax(
        jax.random.normal(k3, (B2, C2, D2, H2, W2), jnp.float32), axis=1)
    target_b = jax.nn.softmax(
        jax.random.normal(k4, (B2, C2, D2, H2, W2), jnp.float32), axis=1)
    loss_b = jax.block_until_ready(
        generalized_dice_loss(pred_b, target_b, smooth=1.0, tile_n=128, n_split=2))
    ref_b = jax.block_until_ready(_reference(pred_b, target_b, smooth=1.0))
    assert jnp.allclose(loss_b, ref_b, atol=1e-5, rtol=1e-5), (loss_b, ref_b)

    # --- Test C: single-channel pred with lower-rank target (unsqueeze) -----
    pred_c = jax.nn.sigmoid(jax.random.normal(k5, (2, 1, 4, 6, 7), jnp.float32))
    target_c = (jax.random.uniform(k2, (2, 4, 6, 7)) > 0.5).astype(jnp.float32)
    loss_c = jax.block_until_ready(generalized_dice_loss(pred_c, target_c, smooth=1.0))
    ref_c = jax.block_until_ready(_reference(pred_c, target_c, smooth=1.0))
    assert jnp.allclose(loss_c, ref_c, atol=1e-5, rtol=1e-5), (loss_c, ref_c)

    # --- Test D: bf16 dense inputs (half HBM traffic), default tiling -------
    pred_d = pred_b.astype(jnp.bfloat16)
    target_d = target_b.astype(jnp.bfloat16)
    loss_d = jax.block_until_ready(generalized_dice_loss(pred_d, target_d, smooth=1.0))
    ref_d = jax.block_until_ready(_reference(pred_d, target_d, smooth=1.0))
    assert jnp.allclose(loss_d, ref_d, atol=1e-4, rtol=1e-4), (loss_d, ref_d)

    print("KERNEL_OK")
</pallas_src>

<mosaic_0001>
module attributes {stable_mosaic.version = 11 : i64} {
  func.func @_gdl_label_kernel(%arg0: i32, %arg1: i32, %arg2: i32, %arg3: memref<1x4x256xf32, #tpu.memory_space<vmem>>, %arg4: memref<1x1x256xi32, #tpu.memory_space<vmem>>, %arg5: memref<1x1x4xf32, #tpu.memory_space<vmem>>, %arg6: memref<1x1x4xf32, #tpu.memory_space<vmem>>, %arg7: memref<1x1x4xf32, #tpu.memory_space<vmem>>, %arg8: memref<1x4xf32, #tpu.memory_space<vmem>>, %arg9: memref<1x4xf32, #tpu.memory_space<vmem>>, %arg10: memref<1x4xf32, #tpu.memory_space<vmem>>) attributes {dimension_semantics = [#tpu.dimension_semantics<parallel>, #tpu.dimension_semantics<parallel>, #tpu.dimension_semantics<arbitrary>], iteration_bounds = array<i64: 2, 1, 1>, scalar_prefetch = 0 : i64, scratch_operands = 3 : i64, tpu.core_type = #tpu.core_type<tc>, window_params = [{transform_indices = @transform_0, window_bounds = array<i64: 1, 4, 256>}, {transform_indices = @transform_1, window_bounds = array<i64: 1, 1, 256>}, {transform_indices = @transform_2, window_bounds = array<i64: 1, 1, 4>}, {transform_indices = @transform_3, window_bounds = array<i64: 1, 1, 4>}, {transform_indices = @transform_4, window_bounds = array<i64: 1, 1, 4>}]} {
    %c0_i32 = arith.constant 0 : i32
    %0 = arith.cmpi eq, %arg2, %c0_i32 : i32
    %1 = arith.extui %0 : i1 to i32
    %c0_i32_0 = arith.constant 0 : i32
    %2 = arith.cmpi ne, %1, %c0_i32_0 : i32
    scf.if %2 {
      %cst = arith.constant 0.000000e+00 : f32
      %19 = vector.broadcast %cst : f32 to vector<1x4xf32>
      %c0 = arith.constant 0 : index
      %c0_8 = arith.constant 0 : index
      %20 = vector.load %arg8[%c0, %c0_8] : memref<1x4xf32, #tpu.memory_space<vmem>>, vector<1x4xf32>
      tpu.vector_store %arg8[%c0, %c0_8], %19 {strides = array<i32>} : memref<1x4xf32, #tpu.memory_space<vmem>>, vector<1x4xf32>,
      %cst_9 = arith.constant 0.000000e+00 : f32
      %21 = vector.broadcast %cst_9 : f32 to vector<1x4xf32>
      %c0_10 = arith.constant 0 : index
      %c0_11 = arith.constant 0 : index
      %22 = vector.load %arg9[%c0_10, %c0_11] : memref<1x4xf32, #tpu.memory_space<vmem>>, vector<1x4xf32>
      tpu.vector_store %arg9[%c0_10, %c0_11], %21 {strides = array<i32>} : memref<1x4xf32, #tpu.memory_space<vmem>>, vector<1x4xf32>,
      %cst_12 = arith.constant 0.000000e+00 : f32
      %23 = vector.broadcast %cst_12 : f32 to vector<1x4xf32>
      %c0_13 = arith.constant 0 : index
      %c0_14 = arith.constant 0 : index
      %24 = vector.load %arg10[%c0_13, %c0_14] : memref<1x4xf32, #tpu.memory_space<vmem>>, vector<1x4xf32>
      tpu.vector_store %arg10[%c0_13, %c0_14], %23 {strides = array<i32>} : memref<1x4xf32, #tpu.memory_space<vmem>>, vector<1x4xf32>,
    } else {
    }
    %c1_i32 = arith.constant 1 : i32
    %3 = arith.muli %arg1, %c1_i32 : i32
    %4 = arith.addi %3, %arg2 : i32
    %c256_i32 = arith.constant 256 : i32
    %5 = arith.muli %4, %c256_i32 : i32
    %c168_i32 = arith.constant 168 : i32
    %6 = arith.subi %c168_i32, %5 : i32
    %7 = tpu.iota {dimensions = array<i32: 0>} : vector<4x256xi32>
    %c256_i32_1 = arith.constant 256 : i32
    %8 = arith.cmpi sge, %6, %c256_i32_1 : i32
    %9 = arith.extui %8 : i1 to i32
    %c0_i32_2 = arith.constant 0 : i32
    %10 = arith.cmpi ne, %9, %c0_i32_2 : i32
    scf.if %10 {
      %c0 = arith.constant 0 : index
      %c0_8 = arith.constant 0 : index
      %c0_9 = arith.constant 0 : index
      %19 = vector.load %arg3[%c0, %c0_8, %c0_9] : memref<1x4x256xf32, #tpu.memory_space<vmem>>, vector<1x4x256xf32>
      %20 = vector.shape_cast %19 : vector<1x4x256xf32> to vector<4x256xf32>
      %c0_10 = arith.constant 0 : index
      %c0_11 = arith.constant 0 : index
      %c0_12 = arith.constant 0 : index
      %21 = vector.load %arg4[%c0_10, %c0_11, %c0_12] : memref<1x1x256xi32, #tpu.memory_space<vmem>>, vector<1x1x256xi32>
      %22 = vector.shape_cast %21 : vector<1x1x256xi32> to vector<1x256xi32>
      %23 = vector.broadcast %22 : vector<1x256xi32> to vector<4x256xi32>
      %24 = arith.cmpi eq, %7, %23 : vector<4x256xi32>
      %25 = arith.extui %24 : vector<4x256xi1> to vector<4x256xi32>
      %26 = arith.sitofp %25 : vector<4x256xi32> to vector<4x256xf32>
      %c0_13 = arith.constant 0 : index
      %c0_14 = arith.constant 0 : index
      %27 = vector.load %arg8[%c0_13, %c0_14] : memref<1x4xf32, #tpu.memory_space<vmem>>, vector<1x4xf32>
      %cst = arith.constant dense<0.000000e+00> : vector<4xf32>
      %28 = vector.multi_reduction <add>, %26, %cst [1] : vector<4x256xf32> to vector<4xf32>
      %29 = vector.shape_cast %28 : vector<4xf32> to vector<1x4xf32>
      %30 = arith.addf %27, %29 : vector<1x4xf32>
      %c0_15 = arith.constant 0 : index
      %c0_16 = arith.constant 0 : index
      %31 = vector.load %arg8[%c0_15, %c0_16] : memref<1x4xf32, #tpu.memory_space<vmem>>, vector<1x4xf32>
      tpu.vector_store %arg8[%c0_15, %c0_16], %30 {strides = array<i32>} : memref<1x4xf32, #tpu.memory_space<vmem>>, vector<1x4xf32>,
      %c0_17 = arith.constant 0 : index
      %c0_18 = arith.constant 0 : index
      %32 = vector.load %arg9[%c0_17, %c0_18] : memref<1x4xf32, #tpu.memory_space<vmem>>, vector<1x4xf32>
      %33 = arith.mulf %20, %26 : vector<4x256xf32>
      %cst_19 = arith.constant dense<0.000000e+00> : vector<4xf32>
      %34 = vector.multi_reduction <add>, %33, %cst_19 [1] : vector<4x256xf32> to vector<4xf32>
      %35 = vector.shape_cast %34 : vector<4xf32> to vector<1x4xf32>
      %36 = arith.addf %32, %35 : vector<1x4xf32>
      %c0_20 = arith.constant 0 : index
      %c0_21 = arith.constant 0 : index
      %37 = vector.load %arg9[%c0_20, %c0_21] : memref<1x4xf32, #tpu.memory_space<vmem>>, vector<1x4xf32>
      tpu.vector_store %arg9[%c0_20, %c0_21], %36 {strides = array<i32>} : memref<1x4xf32, #tpu.memory_space<vmem>>, vector<1x4xf32>,
      %c0_22 = arith.constant 0 : index
      %c0_23 = arith.constant 0 : index
      %38 = vector.load %arg10[%c0_22, %c0_23] : memref<1x4xf32, #tpu.memory_space<vmem>>, vector<1x4xf32>
      %cst_24 = arith.constant dense<0.000000e+00> : vector<4xf32>
      %39 = vector.multi_reduction <add>, %20, %cst_24 [1] : vector<4x256xf32> to vector<4xf32>
      %40 = vector.shape_cast %39 : vector<4xf32> to vector<1x4xf32>
      %41 = arith.addf %38, %40 : vector<1x4xf32>
      %c0_25 = arith.constant 0 : index
      %c0_26 = arith.constant 0 : index
      %42 = vector.load %arg10[%c0_25, %c0_26] : memref<1x4xf32, #tpu.memory_space<vmem>>, vector<1x4xf32>
      tpu.vector_store %arg10[%c0_25, %c0_26], %41 {strides = array<i32>} : memref<1x4xf32, #tpu.memory_space<vmem>>, vector<1x4xf32>,
    } else {
    }
    %c0_i32_3 = arith.constant 0 : i32
    %11 = arith.cmpi sgt, %6, %c0_i32_3 : i32
    %c256_i32_4 = arith.constant 256 : i32
    %12 = arith.cmpi slt, %6, %c256_i32_4 : i32
    %13 = arith.andi %11, %12 : i1
    %14 = arith.extui %13 : i1 to i32
    %c0_i32_5 = arith.constant 0 : i32
    %15 = arith.cmpi ne, %14, %c0_i32_5 : i32
    scf.if %15 {
      %19 = tpu.iota {dimensions = array<i32: 1>} : vector<4x256xi32>
      %20 = vector.broadcast %6 : i32 to vector<4x256xi32>
      %21 = arith.cmpi slt, %19, %20 : vector<4x256xi32>
      %c0 = arith.constant 0 : index
      %c0_8 = arith.constant 0 : index
      %c0_9 = arith.constant 0 : index
      %22 = vector.load %arg3[%c0, %c0_8, %c0_9] : memref<1x4x256xf32, #tpu.memory_space<vmem>>, vector<1x4x256xf32>
      %23 = vector.shape_cast %22 : vector<1x4x256xf32> to vector<4x256xf32>
      %c0_10 = arith.constant 0 : index
      %c0_11 = arith.constant 0 : index
      %c0_12 = arith.constant 0 : index
      %24 = vector.load %arg4[%c0_10, %c0_11, %c0_12] : memref<1x1x256xi32, #tpu.memory_space<vmem>>, vector<1x1x256xi32>
      %25 = vector.shape_cast %24 : vector<1x1x256xi32> to vector<1x256xi32>
      %26 = vector.broadcast %25 : vector<1x256xi32> to vector<4x256xi32>
      %27 = arith.cmpi eq, %7, %26 : vector<4x256xi32>
      %28 = arith.andi %27, %21 : vector<4x256xi1>
      %29 = arith.extui %28 : vector<4x256xi1> to vector<4x256xi32>
      %30 = arith.sitofp %29 : vector<4x256xi32> to vector<4x256xf32>
      %c0_13 = arith.constant 0 : index
      %c0_14 = arith.constant 0 : index
      %31 = vector.load %arg8[%c0_13, %c0_14] : memref<1x4xf32, #tpu.memory_space<vmem>>, vector<1x4xf32>
      %cst = arith.constant dense<0.000000e+00> : vector<4xf32>
      %32 = vector.multi_reduction <add>, %30, %cst [1] : vector<4x256xf32> to vector<4xf32>
      %33 = vector.shape_cast %32 : vector<4xf32> to vector<1x4xf32>
      %34 = arith.addf %31, %33 : vector<1x4xf32>
      %c0_15 = arith.constant 0 : index
      %c0_16 = arith.constant 0 : index
      %35 = vector.load %arg8[%c0_15, %c0_16] : memref<1x4xf32, #tpu.memory_space<vmem>>, vector<1x4xf32>
      tpu.vector_store %arg8[%c0_15, %c0_16], %34 {strides = array<i32>} : memref<1x4xf32, #tpu.memory_space<vmem>>, vector<1x4xf32>,
      %c0_17 = arith.constant 0 : index
      %c0_18 = arith.constant 0 : index
      %36 = vector.load %arg9[%c0_17, %c0_18] : memref<1x4xf32, #tpu.memory_space<vmem>>, vector<1x4xf32>
      %37 = arith.mulf %23, %30 : vector<4x256xf32>
      %cst_19 = arith.constant dense<0.000000e+00> : vector<4xf32>
      %38 = vector.multi_reduction <add>, %37, %cst_19 [1] : vector<4x256xf32> to vector<4xf32>
      %39 = vector.shape_cast %38 : vector<4xf32> to vector<1x4xf32>
      %40 = arith.addf %36, %39 : vector<1x4xf32>
      %c0_20 = arith.constant 0 : index
      %c0_21 = arith.constant 0 : index
      %41 = vector.load %arg9[%c0_20, %c0_21] : memref<1x4xf32, #tpu.memory_space<vmem>>, vector<1x4xf32>
      tpu.vector_store %arg9[%c0_20, %c0_21], %40 {strides = array<i32>} : memref<1x4xf32, #tpu.memory_space<vmem>>, vector<1x4xf32>,
      %c0_22 = arith.constant 0 : index
      %c0_23 = arith.constant 0 : index
      %42 = vector.load %arg10[%c0_22, %c0_23] : memref<1x4xf32, #tpu.memory_space<vmem>>, vector<1x4xf32>
      %cst_24 = arith.constant 0.000000e+00 : f32
      %43 = vector.broadcast %cst_24 : f32 to vector<4x256xf32>
      %44 = arith.select %21, %23, %43 : vector<4x256xi1>, vector<4x256xf32>
      %cst_25 = arith.constant dense<0.000000e+00> : vector<4xf32>
      %45 = vector.multi_reduction <add>, %44, %cst_25 [1] : vector<4x256xf32> to vector<4xf32>
      %46 = vector.shape_cast %45 : vector<4xf32> to vector<1x4xf32>
      %47 = arith.addf %42, %46 : vector<1x4xf32>
      %c0_26 = arith.constant 0 : index
      %c0_27 = arith.constant 0 : index
      %48 = vector.load %arg10[%c0_26, %c0_27] : memref<1x4xf32, #tpu.memory_space<vmem>>, vector<1x4xf32>
      tpu.vector_store %arg10[%c0_26, %c0_27], %47 {strides = array<i32>} : memref<1x4xf32, #tpu.memory_space<vmem>>, vector<1x4xf32>,
    } else {
    }
    %c0_i32_6 = arith.constant 0 : i32
    %16 = arith.cmpi eq, %arg2, %c0_i32_6 : i32
    %17 = arith.extui %16 : i1 to i32
    %c0_i32_7 = arith.constant 0 : i32
    %18 = arith.cmpi ne, %17, %c0_i32_7 : i32
    scf.if %18 {
      %c0 = arith.constant 0 : index
      %c0_8 = arith.constant 0 : index
      %19 = vector.load %arg8[%c0, %c0_8] : memref<1x4xf32, #tpu.memory_space<vmem>>, vector<1x4xf32>
      %c0_9 = arith.constant 0 : index
      %c0_10 = arith.constant 0 : index
      %c0_11 = arith.constant 0 : index
      %20 = vector.load %arg5[%c0_9, %c0_10, %c0_11] : memref<1x1x4xf32, #tpu.memory_space<vmem>>, vector<1x1x4xf32>
      %21 = vector.shape_cast %20 : vector<1x1x4xf32> to vector<1x4xf32>
      %22 = vector.shape_cast %19 : vector<1x4xf32> to vector<1x1x4xf32>
      tpu.vector_store %arg5[%c0_9, %c0_10, %c0_11], %22 {strides = array<i32>} : memref<1x1x4xf32, #tpu.memory_space<vmem>>, vector<1x1x4xf32>,
      %c0_12 = arith.constant 0 : index
      %c0_13 = arith.constant 0 : index
      %23 = vector.load %arg9[%c0_12, %c0_13] : memref<1x4xf32, #tpu.memory_space<vmem>>, vector<1x4xf32>
      %c0_14 = arith.constant 0 : index
      %c0_15 = arith.constant 0 : index
      %c0_16 = arith.constant 0 : index
      %24 = vector.load %arg6[%c0_14, %c0_15, %c0_16] : memref<1x1x4xf32, #tpu.memory_space<vmem>>, vector<1x1x4xf32>
      %25 = vector.shape_cast %24 : vector<1x1x4xf32> to vector<1x4xf32>
      %26 = vector.shape_cast %23 : vector<1x4xf32> to vector<1x1x4xf32>
      tpu.vector_store %arg6[%c0_14, %c0_15, %c0_16], %26 {strides = array<i32>} : memref<1x1x4xf32, #tpu.memory_space<vmem>>, vector<1x1x4xf32>,
      %c0_17 = arith.constant 0 : index
      %c0_18 = arith.constant 0 : index
      %27 = vector.load %arg10[%c0_17, %c0_18] : memref<1x4xf32, #tpu.memory_space<vmem>>, vector<1x4xf32>
      %c0_19 = arith.constant 0 : index
      %c0_20 = arith.constant 0 : index
      %c0_21 = arith.constant 0 : index
      %28 = vector.load %arg7[%c0_19, %c0_20, %c0_21] : memref<1x1x4xf32, #tpu.memory_space<vmem>>, vector<1x1x4xf32>
      %29 = vector.shape_cast %28 : vector<1x1x4xf32> to vector<1x4xf32>
      %30 = vector.shape_cast %27 : vector<1x4xf32> to vector<1x1x4xf32>
      tpu.vector_store %arg7[%c0_19, %c0_20, %c0_21], %30 {strides = array<i32>} : memref<1x1x4xf32, #tpu.memory_space<vmem>>, vector<1x1x4xf32>,
    } else {
    }
    return
  }
  func.func @transform_0(%arg0: i32, %arg1: i32, %arg2: i32) -> (i32, i32, i32) {
    %c1_i32 = arith.constant 1 : i32
    %0 = arith.muli %arg1, %c1_i32 : i32
    %1 = arith.addi %0, %arg2 : i32
    %c0_i32 = arith.constant 0 : i32
    %2 = arith.minsi %1, %c0_i32 : i32
    %c0_i32_0 = arith.constant 0 : i32
    %c0_i32_1 = arith.constant 0 : i32
    return %arg0, %c0_i32_0, %2 : i32, i32, i32
  }
  func.func @transform_1(%arg0: i32, %arg1: i32, %arg2: i32) -> (i32, i32, i32) {
    %c1_i32 = arith.constant 1 : i32
    %0 = arith.muli %arg1, %c1_i32 : i32
    %1 = arith.addi %0, %arg2 : i32
    %c0_i32 = arith.constant 0 : i32
    %2 = arith.minsi %1, %c0_i32 : i32
    %c0_i32_0 = arith.constant 0 : i32
    %c0_i32_1 = arith.constant 0 : i32
    return %arg0, %c0_i32_0, %2 : i32, i32, i32
  }
  func.func @transform_2(%arg0: i32, %arg1: i32, %arg2: i32) -> (i32, i32, i32) {
    %c0_i32 = arith.constant 0 : i32
    %c0_i32_0 = arith.constant 0 : i32
    return %arg0, %arg1, %c0_i32 : i32, i32, i32
  }
  func.func @transform_3(%arg0: i32, %arg1: i32, %arg2: i32) -> (i32, i32, i32) {
    %c0_i32 = arith.constant 0 : i32
    %c0_i32_0 = arith.constant 0 : i32
    return %arg0, %arg1, %c0_i32 : i32, i32, i32
  }
  func.func @transform_4(%arg0: i32, %arg1: i32, %arg2: i32) -> (i32, i32, i32) {
    %c0_i32 = arith.constant 0 : i32
    %c0_i32_0 = arith.constant 0 : i32
    return %arg0, %arg1, %c0_i32 : i32, i32, i32
  }
}

</mosaic_0001>

<bundles_post_ra>
// kernel: generalized_dice_loss.1
= control target key start
LH: loop header
LB: loop body
LE: loop exit
PB: predicated region body
PF: predicated region fallthrough
CT: control target
= control target key end

     0   :  { %s1130_s15 = smov 0   ;;  %s1132_s16 = smov 0   ;;  %s1206_s0 = inlined_call_operand.vmem [shape: f32[2,4,168], index: 0, kind: input, shape index: {}]   ;;  %s1207_s1 = inlined_call_operand.vmem [shape: s32[2,1,168], index: 1, kind: input, shape index: {}]   ;;  %s1208_s2 = inlined_call_operand.vmem [shape: f32[2,1,4], index: 2, kind: output, shape index: {0}]   ;;  %s1209_s3 = inlined_call_operand.vmem [shape: f32[2,1,4], index: 3, kind: output, shape index: {1}]   ;;  %s1210_s4 = inlined_call_operand.vmem [shape: f32[2,1,4], index: 4, kind: output, shape index: {2}]  }
   0x1   :  { %s1134_s17 = smov 0  }
   0x2 LB: > { %s34_s18 = sadd.s32 1, %s1096_s16  ;;  %p1037_p0 = scmp.ge.s32.totalorder %s1100_s17, 1  ;;  %s1100_s17 = sphi %s1134_s17, %s15_s17   ;;  %s1096_s16 = sphi %s1132_s16, %s1212_s16   ;;  %s1092_s15 = sphi %s1130_s15, %s1211_s15  }
   0x3   : > { %p36_p1 = scmp.ge.s32.totalorder %s34_s18, 2  ;;  %p239_p2 = scmp.lt.s32.totalorder %s1100_s17, 3 }
   0x5   : > { %s1214_s18 = smov (%p36_p1, %s34_s18), 0  ;;  %p240_p3 = pnand %p1037_p0, %p239_p2 }
   0x6   : > { %p300_p4 = scmp.lt.s32.totalorder (!%p240_p3), %s1092_s15, 1 }
   0x7   : > { %243 = sbr.rel (%p240_p3) target bundleno = 321 (0x141), region = 28 }
   0xc   : > { %vm349_vm0 = vcmask 24576   ;;  %v356_v0 = vlaneseq  ;;  %v1102_v1 = vmov 0.0   ;;  %s1216_s15 = smov (!%p300_p4, %s1092_s15), 1  ;;  %vm637_vm2 = vcmask 1043456  }
   0xd   : > { %350 = vst.msk [vmem:[#allocation2] sm:$0x1] %vm349_vm0, %v1102_v1  ;;  %351 = vst.msk [vmem:[#allocation3] sm:$0x1] %vm349_vm0, %v1102_v1  ;;  %s1040_s19 = sshll.u32 %s1216_s15, 1  ;;  %s1047_s23 = sshll.u32 %s1216_s15, 3 }
   0xe   : > { %352 = vst.msk [vmem:[#allocation4] sm:$0x1] %vm349_vm0, %v1102_v1  ;;  %v357_v2 = vshrl.u32 %v356_v0, 7  ;;  %v613_v3 = vand.u32 127, %v356_v0  ;;  %s322_s22 = scalar_lea.vmem %s1207_s1, %s1040_s19  ;;  %s307_s26 = scalar_lea.vmem %s1206_s0, %s1047_s23  ;;  %v1103_v27 = vmov 0  }
   0xf   : > { %v619_v7 = vld [vmem:[%s322_s22] sm:$0x3]  ;;  %1075 = vset.pattern.permute.xlu1 %v1103_v27  ;;  %1076 = vset.pattern.permute.xlu0 %v1103_v27  ;;  %v1104_v29 = vmov 1966171168   ;;  %s332_s29 = scalar_lea.vmem %s1208_s2, %s1216_s15  ;;  %s344_s6 = scalar_lea.vmem %s1210_s4, %s1216_s15 }
  0x10   : > { %v614_v4 = vadd.s32 128, %v613_v3  ;;  %v1154_v5 = vsub.s32 0, %v357_v2  ;;  %v1156_v6 = vsub.s32 1, %v357_v2  ;;  %v618_v10 = vld [vmem:[%s307_s26] sm:$0xff]  ;;  %v689_v28 = vsub.s32 %v613_v3, %v357_v2  ;;  %s338_s9 = scalar_lea.vmem %s1209_s3, %s1216_s15 }
  0x11   : > { %v790_v11 = vcombine.high %v618_v10, %v618_v10  ;;  %v794_v13 = vsel %vm637_vm2, %v618_v10, 0.0  ;;  %v663_v30 = vunpack.c.l.s4 %v1104_v29  ;;  %v654_v32 = vsub.s32 2, %v357_v2 }
  0x12   : > { %vm617_vm1 = vcmp.lt.s32.totalorder %v614_v4, 168  ;;  %v623_v8 = vrot.slane %v619_v7, %v1154_v5  ;;  %v627_v9 = vrot.slane %v619_v7, %v1156_v6  ;;  %v658_v33 = vsub.s32 3, %v357_v2 }
  0x13   : > { %v793_v16 = vsel %vm617_vm1, %v790_v11, 0.0  ;;  %v664_v31 = vunpack.c.0.s8 %v663_v30 }
  0x14   : > { %vm628_vm3 = vcmp.eq.s32.totalorder %v357_v2, %v623_v8  ;;  %vm629_vm4 = vcmp.eq.s32.totalorder %v357_v2, %v627_v9  ;;  %v795_v19 = vsel %vm637_vm2, %v793_v16, 0.0  ;;  %v636_v8 = vld [vmem:[#allocation2] sm:$0x1] }
  0x15   : > { %vm631_vm5 = vmand %vm629_vm4, %vm617_vm1  ;;  %v1043_v12 = vsel %vm628_vm3, 1.0, %v1102_v1  ;;  %v796_v21 = vadd.f32 %v795_v19, %v794_v13  ;;  %v667_v34 = vsub.s32 %v664_v31, %v357_v2 }
  0x16   : > { %v1044_v14 = vsel %vm631_vm5, 1.0, %v1102_v1  ;;  %v638_v15 = vsel %vm637_vm2, %v1043_v12, 0.0 }
  0x17   : > { %v639_v17 = vsel %vm637_vm2, %v1044_v14, 0.0  ;;  %v712_v18 = vcombine.low %v1043_v12, %v1044_v14  ;;  %797 = vadd.xlane.f32.xlu1 %v796_v21 }
  0x18   : > { %v640_v20 = vadd.f32 %v639_v17, %v638_v15  ;;  %v788_v15 = vld [vmem:[#allocation4] sm:$0x1] }
  0x19   : > { %v714_v22 = vmul.f32 %v712_v18, %v618_v10  ;;  %v709_v18 = vld [vmem:[#allocation3] sm:$0x1] }
  0x1a   : > { %641 = vadd.xlane.f32.xlu0 %v640_v20 }
  0x1b   : > { %v716_v23 = vcombine.high %v714_v22, %v714_v22  ;;  %v718_v24 = vsel %vm637_vm2, %v714_v22, 0.0 }
  0x1d   : > { %v719_v25 = vsel %vm637_vm2, %v716_v23, 0.0 }
  0x1e   : > { %v720_v26 = vadd.f32 %v719_v25, %v718_v24 }
  0x20   : > { %721 = vadd.xlane.f32.xlu0 %v720_v26 }
  0xa0   : > { %v798_v36 = vpop.xlane.xlu1 %797 }
  0xa1   : > { %v803_v41 = vrot.slane %v798_v36, %v1154_v5  ;;  %v807_v42 = vrot.slane %v798_v36, %v1156_v6  ;;  %v811_v43 = vrot.slane %v798_v36, %v654_v32  ;;  %v815_v44 = vrot.slane %v798_v36, %v658_v33 }
  0xa3   : > { %v642_v35 = vpop.xlane.xlu0 %641  ;;  %v816_v47 = vcombine.low %v803_v41, %v807_v42  ;;  %v817_v48 = vcombine.low %v811_v43, %v815_v44 }
  0xa4   : > { %v647_v37 = vrot.slane %v642_v35, %v1154_v5  ;;  %v651_v38 = vrot.slane %v642_v35, %v1156_v6  ;;  %v655_v39 = vrot.slane %v642_v35, %v654_v32  ;;  %v659_v40 = vrot.slane %v642_v35, %v658_v33 }
  0xa5   : > { %v824_v52 = vrot.slane %v816_v47, %v667_v34  ;;  %v831_v53 = vrot.slane %v817_v48, %v667_v34 }
  0xa6   : > { %v660_v45 = vcombine.low %v647_v37, %v651_v38  ;;  %v661_v46 = vcombine.low %v655_v39, %v659_v40 }
  0xa7   : > { %v832_v59 = vcombine.low %v824_v52, %v831_v53 }
  0xa8   : > { %v668_v49 = vrot.slane %v660_v45, %v667_v34  ;;  %v675_v50 = vrot.slane %v661_v46, %v667_v34 }
  0xa9   : > { %v722_v51 = vpop.xlane.xlu0 %721  ;;  %v839_v1 = vrot.slane %v832_v59, %v667_v34 }
  0xaa   : > { %v727_v54 = vrot.slane %v722_v51, %v1154_v5  ;;  %v731_v55 = vrot.slane %v722_v51, %v1156_v6  ;;  %v735_v56 = vrot.slane %v722_v51, %v654_v32  ;;  %v739_v57 = vrot.slane %v722_v51, %v658_v33 }
  0xab   : > { %v676_v58 = vcombine.low %v668_v49, %v675_v50 }
  0xac   : > { %v740_v60 = vcombine.low %v727_v54, %v731_v55  ;;  %v741_v61 = vcombine.low %v735_v56, %v739_v57 }
  0xad   : > { %v683_v62 = vrot.slane %v676_v58, %v667_v34 }
  0xae   : > { %v748_v63 = vrot.slane %v740_v60, %v667_v34  ;;  %v755_v0 = vrot.slane %v741_v61, %v667_v34 }
  0xaf   : > { %685 = vperm.xlu1 %1075, %v683_v62  }
  0xb0   : > { %v756_v2 = vcombine.low %v748_v63, %v755_v0 }
  0xb2   : > { %v763_v3 = vrot.slane %v756_v2, %v667_v34 }
  0xb3   : > { %841 = vperm.xlu1 %1075, %v839_v1  }
  0xb4   : > { %765 = vperm.xlu0 %1076, %v763_v3  }
 0x12a   : > { %v686_v4 = vpop.permute.xlu1 %685 }
 0x12b   : > { %v690_v7 = vrot.slane %v686_v4, %v689_v28 }
 0x12d   : > { %v697_v5 = vrot.slane %v690_v7, %v667_v34 }
 0x12e   : > { %v842_v6 = vpop.permute.xlu1 %841 }
 0x12f   : > { %v704_v9 = vrot.slane %v697_v5, %v667_v34  ;;  %v846_v10 = vrot.slane %v842_v6, %v689_v28  ;;  %v766_v11 = vpop.permute.xlu0 %765 }
 0x130   : > { %v770_v12 = vrot.slane %v766_v11, %v689_v28 }
 0x131   : > { %v706_v13 = vadd.f32 %v704_v9, %v636_v8  ;;  %v853_v14 = vrot.slane %v846_v10, %v667_v34 }
 0x132   : > { %v777_v16 = vrot.slane %v770_v12, %v667_v34 }
 0x133   : > { %708 = vst.msk [vmem:[#allocation2] sm:$0x1] %vm349_vm0, %v706_v13  ;;  %v860_v17 = vrot.slane %v853_v14, %v667_v34 }
 0x134   : > { %v784_v19 = vrot.slane %v777_v16, %v667_v34 }
 0x135   : > { %v862_v20 = vadd.f32 %v860_v17, %v788_v15 }
 0x136   : > { %v786_v21 = vadd.f32 %v784_v19, %v709_v18 }
 0x137   : > { %863 = vst.msk [vmem:[#allocation4] sm:$0x1] %vm349_vm0, %v862_v20 }
 0x138   : > { %787 = vst.msk [vmem:[#allocation3] sm:$0x1] %vm349_vm0, %v786_v21 }
 0x13a   : > { %v867_v22 = vld [vmem:[#allocation2] sm:$0x1] }
 0x13b   : > { %869 = vst.msk [vmem:[%s332_s29] sm:$0x1] %vm349_vm0, %v867_v22 }
 0x13e   : > { %v872_v23 = vld [vmem:[#allocation4] sm:$0x1] }
 0x13f   : > { %873 = vst.msk [vmem:[%s344_s6] sm:$0x1] %vm349_vm0, %v872_v23  ;;  %v870_v24 = vld [vmem:[#allocation3] sm:$0x1] }
 0x140   : > { %871 = vst.msk [vmem:[%s338_s9] sm:$0x1] %vm349_vm0, %v870_v24 }
 0x141 PF: > { %s15_s17 = sadd.s32 1, %s1100_s17   ;;  %s1211_s15 = smov %s1096_s16 }
 0x142   : > { %p12_p5 = scmp.ge.s32.totalorder %s15_s17, 4   ;;  %s1212_s16 = smov %s1214_s18 }
 0x144   :  { %14 = sbr.rel (!%p12_p5) target bundleno = 2 (0x2), region = 101 }

</bundles_post_ra>
